<compile_context>
chip_gen: v7x
topology: tpu7x:2x2x1
jax: 0.10.0
libtpu: 0.0.40
codegen_flags: <defaults>
</compile_context>

<pallas_src>
import jax
import jax.numpy as jnp
from jax.experimental import pallas as pl
from jax.experimental.pallas import tpu as pltpu


# ----------------------------------------------------------------------------
# 1. FLAME linear blendshape matmul (the FLAME_MP hot path, minus LBS pose)
# ----------------------------------------------------------------------------
def _blendshape_kernel(params_ref, dirs_ref, template_ref, out_ref):
    # params (B, K) @ dirs (K, TILE) + template (1, TILE); flame_scale is
    # pre-folded into dirs/template at weight-prep time (mem-bound kernel).
    delta = jnp.dot(params_ref[...], dirs_ref[...],
                    preferred_element_type=jnp.float32)
    out_ref[...] = template_ref[...] + delta


def pick_blendshape_tile(V3, *, max_tile=2048, lane=128):
    """Largest lane-multiple tile (<= max_tile) that still yields >= 2 grid steps.

    >= 2 steps keeps both v7x TensorCores busy (dimension_semantics=("parallel",)
    shards the grid across them); the large tile amortizes per-step overhead.
    Real FLAME (3*5023 = 15069) -> tile 2048, 8 steps.  v5e/v6e are unaffected.
    """
    for t in (2048, 1024, 512, 256, 128):
        if t <= max_tile and pl.cdiv(V3, t) >= 2:
            return t
    return lane  # tiny V3: single small tile


def prepare_blendshape_weights(dirs, template, flame_scale, *, tile):
    """ONE-TIME weight prep (call at init, not per forward).

    Folds flame_scale into the weights, casts dirs to bf16 (halves the HBM bytes
    the kernel actually streams) and pads V3 up to a multiple of `tile`.
    Doing this per call would re-read/re-write the whole (K, V3) array in XLA
    every forward, which costs more HBM traffic than the kernel itself.
    """
    K, V3 = dirs.shape
    ntiles = max(pl.cdiv(V3, tile), 1)
    V3p = ntiles * tile
    if V3p != V3:
        pad = V3p - V3
        dirs = jnp.pad(dirs, ((0, 0), (0, pad)))
        template = jnp.pad(template, ((0, 0), (0, pad)))
    dirs_b = (dirs * flame_scale).astype(jnp.bfloat16)
    tmpl_f = (template * flame_scale).astype(jnp.float32)
    return dirs_b, tmpl_f, V3


def flame_blendshapes(params, dirs_prepped, tmpl_prepped, v3_out, *, tile):
    """verts(B, 3V) = flame_scale * (template + params @ dirs), weights pre-prepped."""
    B, K = params.shape
    Kp, V3p = dirs_prepped.shape
    assert K == Kp and V3p % tile == 0
    ntiles = V3p // tile

    params_b = params.astype(jnp.bfloat16)       # (B, K): tiny, negligible per call

    out = pl.pallas_call(
        _blendshape_kernel,
        out_shape=jax.ShapeDtypeStruct((B, V3p), jnp.float32),
        grid_spec=pltpu.PrefetchScalarGridSpec(
            num_scalar_prefetch=0,
            grid=(ntiles,),
            in_specs=[
                pl.BlockSpec((B, K), lambda j: (0, 0)),       # params: resident
                pl.BlockSpec((K, tile), lambda j: (0, j)),    # blendshape dirs tile (bf16)
                pl.BlockSpec((1, tile), lambda j: (0, j)),    # template tile
            ],
            out_specs=pl.BlockSpec((B, tile), lambda j: (0, j)),
        ),
        compiler_params=pltpu.CompilerParams(
            dimension_semantics=("parallel",)),
    )(params_b, dirs_prepped, tmpl_prepped)
    return out[:, :v3_out]


# ----------------------------------------------------------------------------
# 2. PerspectiveCameras.transform_points_screen (landmarks -> pixel coords)
#    Left to plain XLA per perf review: ~6 KB of data / ~2K FLOPs, a standalone
#    pallas_call launch + DMA setup would dominate by orders of magnitude.
#    Convention (square-image approximation of PyTorch3D):
#      X_cam = X_world @ R + T ;  ndc = f * xy/z + p ;  screen = (S/2) * (1 - ndc)
# ----------------------------------------------------------------------------
def project_points_screen(pts, R, T, focal, principal, image_size):
    """pts (B, N, 3), R (B,3,3), T (B,3), focal (2,), principal (2,) -> (B, N, 2)."""
    x_cam = jnp.einsum('bni,bij->bnj', pts, R) + T[:, None, :]
    xy = x_cam[..., :2]
    z = x_cam[..., 2:3]
    ndc = focal[None, None, :] * (xy / z) + principal[None, None, :]
    return (float(image_size) / 2.0) * (1.0 - ndc)


# ----------------------------------------------------------------------------
# 3. Alpha-masked overlay compositing:
#    vis = where(alpha > 0.5, frame*0.3 + image*0.7, frame)
#    Grid = (B, H//th); frame/image/out blocks (1, C, th, W), alpha block
#    (1, 1, th, W) broadcast over channels inside the kernel (alpha DMA'd once,
#    compare computed once).  Compute in f32, store in the input dtype.
# ----------------------------------------------------------------------------
def _composite_kernel(frame_ref, image_ref, alpha_ref, out_ref):
    f = frame_ref[...].astype(jnp.float32)     # (1, C, th, W)
    im = image_ref[...].astype(jnp.float32)    # (1, C, th, W)
    a = alpha_ref[...].astype(jnp.float32)     # (1, 1, th, W) -> broadcasts over C
    blended = f + 0.7 * (im - f)               # == 0.3*f + 0.7*im (one fewer multiply)
    out_ref[...] = jnp.where(a > 0.5, blended, f).astype(out_ref.dtype)


def composite_overlay(frames, images, alpha):
    """frames/images (B,C,H,W), alpha (B,1,H,W) -> (B,C,H,W) in frames.dtype.

    th capped at 128: (1, C, 128, W) blocks for 512-wide f32 images stay well
    under v5e's 16 MiB scoped-VMEM default (no vmem_limit_bytes needed), while
    remaining HBM-roofline bound on every generation.
    """
    B, C, H, W = frames.shape
    th = H
    for cand in (128, 64, 32, 16, 8):
        if H % cand == 0:
            th = cand
            break
    grid = (B, H // th)
    return pl.pallas_call(
        _composite_kernel,
        out_shape=jax.ShapeDtypeStruct((B, C, H, W), frames.dtype),
        grid_spec=pltpu.PrefetchScalarGridSpec(
            num_scalar_prefetch=0,
            grid=grid,
            in_specs=[
                pl.BlockSpec((1, C, th, W), lambda b, h: (b, 0, h, 0)),  # frame
                pl.BlockSpec((1, C, th, W), lambda b, h: (b, 0, h, 0)),  # image
                pl.BlockSpec((1, 1, th, W), lambda b, h: (b, 0, h, 0)),  # alpha (once)
            ],
            out_specs=pl.BlockSpec((1, C, th, W), lambda b, h: (b, 0, h, 0)),
        ),
        compiler_params=pltpu.CompilerParams(
            dimension_semantics=("parallel", "parallel")),
    )(frames, images, alpha)


# ----------------------------------------------------------------------------
# End-to-end forward (glue in plain JAX, hot paths in Pallas)
# ----------------------------------------------------------------------------
if __name__ == "__main__":
    key = jax.random.PRNGKey(0)
    ks = jax.random.split(key, 10)

    B = 2                   # batch (len(frame_names))
    V = 500                 # synthetic FLAME vertex count (real FLAME ~5023); 3V=1500
    N_SHAPE, N_EXP = 100, 50
    H = W = 128             # small stand-in for image_size=512 (lane-dense W)
    IMAGE_SIZE = float(W)
    FLAME_SCALE = 5.0
    N68, NDENSE = 68, 105

    # --- deterministic synthetic FLAME "weights" (module __init__ shapes) ---
    v_template = jax.random.normal(ks[0], (1, 3 * V), jnp.float32) * 0.1
    shape_dirs = jax.random.normal(ks[1], (N_SHAPE, 3 * V), jnp.float32) * 0.01
    exp_dirs = jax.random.normal(ks[2], (N_EXP, 3 * V), jnp.float32) * 0.01
    dirs = jnp.concatenate([shape_dirs, exp_dirs], axis=0)          # (150, 3V)

    # --- ONE-TIME weight prep (would live in __init__, not in forward) ---
    V3 = 3 * V
    TILE = pick_blendshape_tile(V3)                                  # 1024 -> 2 grid steps
    dirs_prepped, tmpl_prepped, v3_out = prepare_blendshape_weights(
        dirs, v_template, FLAME_SCALE, tile=TILE)
    jax.block_until_ready((dirs_prepped, tmpl_prepped))

    # --- batch data ---
    shape_code = jax.random.normal(ks[3], (N_SHAPE,), jnp.float32)  # shared, expanded to batch
    expression = jax.random.normal(ks[4], (B, N_EXP), jnp.float32)
    # TODO(synk): FLAME LBS pose blendshapes / joint-rotation skinning (flame_pose) not ported.
    # frames/images are streamed as bf16 (0-255 pixel values are exact in bf16).
    frames = (jax.random.uniform(ks[5], (B, 3, H, W), jnp.float32) * 255.0).astype(jnp.bfloat16)

    # camera extrinsics (transform_matrix[:, :3, :3] / [:, :3, 3]) and intrinsics
    R = jnp.tile(jnp.eye(3, dtype=jnp.float32)[None], (B, 1, 1))                 # (B,3,3)
    T = jnp.tile(jnp.array([0.0, 0.0, 4.0], jnp.float32)[None], (B, 1))          # (B,3)
    focal = jnp.array([2.0, 2.0], jnp.float32)
    principal = jnp.array([0.0, 0.0], jnp.float32)

    # --- FLAME forward: linear blendshapes * flame_scale (Pallas matmul) ---
    params = jnp.concatenate([jnp.tile(shape_code[None], (B, 1)), expression], axis=1)  # (B,150)
    verts_flat = flame_blendshapes(params, dirs_prepped, tmpl_prepped, v3_out, tile=TILE)
    verts = verts_flat.reshape(B, V, 3)

    # landmark selection (glue; stand-in for FLAME's barycentric landmark embedding)
    # TODO(synk): faithful FLAME landmark embedding (face barycentric interp) not ported.
    lmk68 = verts[:, :N68, :]                                  # (B,68,3)
    lmk_dense = verts[:, :NDENSE, :]                           # (B,105,3)

    # --- cameras.transform_points_screen(...)[..., :2]  (plain XLA; see note above) ---
    points_68 = project_points_screen(lmk68, R, T, focal, principal, IMAGE_SIZE)      # (B,68,2)
    points_dense = project_points_screen(lmk_dense, R, T, focal, principal, IMAGE_SIZE)  # (B,105,2)

    # --- renderer outputs ---
    # TODO(synk): Point_Renderer / Mesh_Renderer (PyTorch3D rasterization) have no clean
    # Pallas equivalent; renderer outputs are synthesized deterministically here.
    images = (jax.random.uniform(ks[6], (B, 3, H, W), jnp.float32) * 255.0).astype(jnp.bfloat16)
    alpha = (jax.random.uniform(ks[7], (B, 1, H, W), jnp.float32) > 0.4).astype(jnp.float32)

    # --- alpha-masked overlay (Pallas): vis[mask] = frame*0.3 + image*0.7 ---
    vis = composite_overlay(frames, images, alpha)              # (B,3,H,W) bf16

    # TODO(synk): torchvision.draw_keypoints / draw_bounding_boxes / make_grid are
    # CPU visualization utilities with no Pallas equivalent.

    jax.block_until_ready((verts, points_68, points_dense, vis))
    print("KERNEL_OK")
</pallas_src>

<mosaic_0001>
module attributes {stable_mosaic.version = 11 : i64} {
  func.func @_blendshape_kernel(%arg0: i32, %arg1: memref<2x150xbf16, #tpu.memory_space<vmem>>, %arg2: memref<150x1024xbf16, #tpu.memory_space<vmem>>, %arg3: memref<1x1024xf32, #tpu.memory_space<vmem>>, %arg4: memref<2x1024xf32, #tpu.memory_space<vmem>>) attributes {dimension_semantics = [#tpu.dimension_semantics<parallel>], iteration_bounds = array<i64: 2>, scalar_prefetch = 0 : i64, scratch_operands = 0 : i64, tpu.core_type = #tpu.core_type<tc>, window_params = [{pipeline_mode = #tpu.pipeline_mode<synchronous>, transform_indices = @transform_0, window_bounds = array<i64: 2, 150>}, {transform_indices = @transform_1, window_bounds = array<i64: 150, 1024>}, {transform_indices = @transform_2, window_bounds = array<i64: 1, 1024>}, {transform_indices = @transform_3, window_bounds = array<i64: 2, 1024>}]} {
    %c0 = arith.constant 0 : index
    %c0_0 = arith.constant 0 : index
    %0 = vector.load %arg1[%c0, %c0_0] : memref<2x150xbf16, #tpu.memory_space<vmem>>, vector<2x150xbf16>
    %c0_1 = arith.constant 0 : index
    %c0_2 = arith.constant 0 : index
    %1 = vector.load %arg2[%c0_1, %c0_2] : memref<150x1024xbf16, #tpu.memory_space<vmem>>, vector<150x1024xbf16>
    %cst = arith.constant dense<0.000000e+00> : vector<2x1024xf32>
    %2 = tpu.matmul %0, %1, %cst {dimension_numbers = #tpu.dot_dimension_numbers<[1], [0], [0], [1], [0, 0, 1, 1], [], []>} : vector<2x150xbf16>, vector<150x1024xbf16>, vector<2x1024xf32> -> vector<2x1024xf32>
    %c0_3 = arith.constant 0 : index
    %c0_4 = arith.constant 0 : index
    %3 = vector.load %arg3[%c0_3, %c0_4] : memref<1x1024xf32, #tpu.memory_space<vmem>>, vector<1x1024xf32>
    %4 = vector.broadcast %3 : vector<1x1024xf32> to vector<2x1024xf32>
    %5 = arith.addf %4, %2 : vector<2x1024xf32>
    %c0_5 = arith.constant 0 : index
    %c0_6 = arith.constant 0 : index
    %6 = vector.load %arg4[%c0_5, %c0_6] : memref<2x1024xf32, #tpu.memory_space<vmem>>, vector<2x1024xf32>
    tpu.vector_store %arg4[%c0_5, %c0_6], %5 {strides = array<i32>} : memref<2x1024xf32, #tpu.memory_space<vmem>>, vector<2x1024xf32>,
    return
  }
  func.func @transform_0(%arg0: i32) -> (i32, i32) {
    %c0_i32 = arith.constant 0 : i32
    %c0_i32_0 = arith.constant 0 : i32
    %c0_i32_1 = arith.constant 0 : i32
    return %c0_i32, %c0_i32_0 : i32, i32
  }
  func.func @transform_1(%arg0: i32) -> (i32, i32) {
    %c0_i32 = arith.constant 0 : i32
    %c0_i32_0 = arith.constant 0 : i32
    return %c0_i32, %arg0 : i32, i32
  }
  func.func @transform_2(%arg0: i32) -> (i32, i32) {
    %c0_i32 = arith.constant 0 : i32
    %c0_i32_0 = arith.constant 0 : i32
    return %c0_i32, %arg0 : i32, i32
  }
  func.func @transform_3(%arg0: i32) -> (i32, i32) {
    %c0_i32 = arith.constant 0 : i32
    %c0_i32_0 = arith.constant 0 : i32
    return %c0_i32, %arg0 : i32, i32
  }
}

</mosaic_0001>

<bundles_post_ra>
// kernel: tpu_custom_call.1
= control target key start
LH: loop header
LB: loop body
LE: loop exit
PB: predicated region body
PF: predicated region fallthrough
CT: control target
= control target key end

     0   :  { %8 = vsyncpa [#allocation3], 0  ;;  %s1867_s0 = inlined_call_operand.hbm [shape: bf16[2,150], index: 0, kind: input, shape index: {}]   ;;  %s1868_s1 = inlined_call_operand.hbm [shape: bf16[150,2048], index: 1, kind: input, shape index: {}]   ;;  %s1869_s2 = inlined_call_operand.hbm [shape: f32[1,2048], index: 2, kind: input, shape index: {}]   ;;  %s1870_s3 = inlined_call_operand.hbm [shape: f32[2,2048], index: 3, kind: output, shape index: {}]  }
   0x1   :  { %9 = vsyncpa [#allocation6], 0 }
   0x2   :  { %11 = vsyncpa [#allocation6 + $0x1], 0 }
   0x3   :  { %12 = vsyncpa [#allocation4], 0 }
   0x4   :  { %14 = vsyncpa [#allocation4 + $0x1], 0  ;;  %s1504_s12 = smov 0   ;;  %s1506_s13 = smov 0  }
   0x5   :  { %s1508_s14 = smov 0   ;;  %s1510_s15 = smov 0  }
   0x6 LB: > { %s1525_s16 = sadd.s32 1, %s1473_s15   ;;  %s48_s17 = sadd.s32 1, %s1469_s14  ;;  %s1473_s15 = sphi %s1510_s15, %s1897_s15   ;;  %s1469_s14 = sphi %s1508_s14, %s1896_s14   ;;  %s1465_s13 = sphi %s1506_s13, %s1895_s13   ;;  %s1461_s12 = sphi %s1504_s12, %s1894_s12  }
   0x7   : > { %s45_s18 = ssub.s32 %s1473_s15, %s1525_s16  ;;  %p55_p0 = scmp.ne.s32.totalorder %s1469_s14, %s1465_s13 }
   0x8   : > { %p46_p1 = scmp.eq.s32.totalorder %s45_s18, 0  ;;  %p56_p2 = scmp.eq.s32.totalorder %s1473_s15, 0 }
   0x9   : > { %p1266_p4 = scmp.lt.s32.totalorder %s1473_s15, 2  ;;  %s148_s20 = sand.u32 1, %s1473_s15  }
   0xa   : > { %s1536_s19 = scalar_select %p46_p1, %s1469_s14, %s48_s17  }
   0xb   : > { %p57_p5 = por %p56_p2, %p55_p0  ;;  %s150_s21 = sand.u32 1, %s1469_s14  }
   0xc   : > { %s1238_s22 = smul.u32 608, %s150_s21  ;;  %s1235_s23 = sshll.u32 %s1473_s15, 9 }
   0xd   : > { %s1549_s26 = scalar_lea.hbm %s1868_s1, %s1235_s23  ;;  %p1551_p6 = pnand %p1266_p4, %p57_p5 }
   0xe   : > { %s152_s28 = scalar_lea.vmem [#allocation5], %s1238_s22  ;;  %s1557_s30 = scalar_lea.sflag [#allocation6], %s148_s20 }
   0xf   : > { %s1878_s27 = scalar_select %p1551_p6, 1, 0 }
  0x10   : > { %s159_s29 = sshll.u32 %s152_s28, 4  ;;  %s1315_s4 = scalar_lea.hbm %s1549_s26, 9728  ;;  %s1555_s29 = int_to_ptr.vmem [resolvable:$true] %s159_s29 }
  0x11   : > { %p1316_p7 = scmp.ne.s32.totalorder %s1549_s26, %s1315_s4  ;;  %p1872_p8 = pneg %p1551_p6 }
  0x12   : > { %s1320_s7 = scalar_lea.hbm %s1868_s1, 19456  ;;  %p1321_p11 = scmp.lt.u32.totalorder %s1549_s26, %s1868_s1 }
  0x13   : > { %p1318_p9 = pnand %p1872_p8, %p1316_p7  ;;  %p1322_p12 = scmp.lt.u32.totalorder %s1320_s7, %s1315_s4 }
  0x14   : > { %p1324_p1 = scmp.lt.u32.totalorder %s1315_s4, %s1549_s26 }
  0x15   : > { %p1319_p10 = pneg %p1318_p9  ;;  %p1323_p13 = por %p1322_p12, %p1321_p11 }
  0x17   : > { %p1325_p2 = por %p1324_p1, %p1323_p13 }
  0x19   : > { %p1326_p4 = pnand %p1325_p2, %p1319_p10 }
  0x1b   : > { %1329 = shalt.err (!%p1326_p4)
}
  0x1c   : > { %s1330_s10 = scalar_lea.vmem %s1555_s29, 9728  ;;  %s1475_s11 = smov [#allocation5]  }
  0x1d   : > { %p1331_p5 = scmp.ne.s32.totalorder %s1555_s29, %s1330_s10  ;;  %s1335_s17 = sshll.u32 %s1475_s11, 4  ;;  %s1336_s17 = int_to_ptr.vmem [resolvable:$false] %s1335_s17 }
  0x1e   : > { %s1337_s18 = scalar_lea.vmem %s1336_s17, 19456  ;;  %p1338_p3 = scmp.lt.s32.totalorder %s1555_s29, %s1336_s17 }
  0x1f   : > { %p1333_p7 = pnand %p1331_p5, %p1872_p8  ;;  %p1339_p11 = scmp.lt.s32.totalorder %s1337_s18, %s1330_s10 }
  0x21   : > { %p1334_p9 = pneg %p1333_p7  ;;  %p1340_p12 = por %p1339_p11, %p1338_p3 }
  0x23   : > { %p1341_p13 = pnand %p1340_p12, %p1334_p9 }
  0x25   : > { %1344 = shalt.err (!%p1341_p13)
}
  0x26   : > { %s1476_s20 = smov 1024   ;;  %s1477_s22 = smov 512  }
  0x27   : > { %s1478_s23 = smov 32   ;;  %s1586_s24 = sadd.s32 4294967295, %s1473_s15  }
  0x28   : > { %1257 = dma.hbm_to_vmem [thread:$0]  (!%p1551_p6), %s1549_s26, 9728, %s1555_s29, %s1557_s30, %s1476_s20, %s1477_s22, %s1478_s23  }
  0x29   : > { %s1128_s25 = sadd.s32 4294967294, %s1473_s15   ;;  %p61_p3 = scmp.ne.s32.totalorder %s1465_s13, %s1461_s12 }
  0x2a   : > { %p1871_p10 = scmp.eq.s32.totalorder %s1586_s24, 0  ;;  %p111_p1 = scmp.eq.s32.totalorder %s1586_s24, 1 }
  0x2b   : > { %p117_p2 = scmp.eq.s32.totalorder %s1128_s25, 1  ;;  %p1129_p4 = scmp.ge.s32.totalorder %s1473_s15, 1 }
  0x2c   : > { %p1596_p5 = por %p1871_p10, %p61_p3  ;;  %p1603_p7 = por %p111_p1, %p55_p0 }
  0x2d   : > { %p1607_p9 = por %p117_p2, %p61_p3  ;;  %p124_p11 = scmp.lt.s32.totalorder %s1473_s15, 3 }
  0x2e   : > { %s1879_s28 = scalar_select %p1596_p5, 1, 0 }
  0x2f   : > { %s1880_s26 = scalar_select %p1603_p7, 1, 0 }
  0x30   : > { %s1881_s29 = scalar_select %p1607_p9, 1, 0 }
  0x31   : > { %p1612_p12 = pnand %p1129_p4, %p124_p11  ;;  %s1479_s5 = smov [#allocation2]  }
  0x32   : > { %s137_s6 = sshll.u32 %s1479_s5, 4  ;;  %s1134_s7 = sshll.u32 %s150_s21, 3  ;;  %s138_s6 = int_to_ptr.vmem [resolvable:$true] %s137_s6 }
  0x33   : > { %s1882_s4 = scalar_select %p1612_p12, 1, 0 }
  0x34   : > { %p1250_p13 = pneg %p1612_p12  ;;  %s1236_s8 = sshll.u32 %s1473_s15, 7 }
  0x35   : > { %s173_s9 = scalar_lea.vmem [#allocation7], %s1134_s7  ;;  %s1630_s20 = scalar_lea.hbm %s1869_s2, %s1236_s8 }
  0x36   : > { %s181_s10 = sshll.u32 %s173_s9, 4  ;;  %p1623_p0 = pnand %p1250_p13, %p1871_p10  ;;  %s1632_s10 = int_to_ptr.vmem [resolvable:$true] %s181_s10 }
  0x37   : > { %s1345_s23 = scalar_lea.hbm %s1867_s0, 32 }
  0x38   : > { %p1346_p3 = scmp.ne.s32.totalorder %s1867_s0, %s1345_s23  ;;  %p1347_p1 = pneg %p1623_p0 }
  0x39   : > { %p1352_p11 = scmp.lt.u32.totalorder %s1345_s23, %s1867_s0 }
  0x3a   : > { %p1348_p2 = pnand %p1347_p1, %p1346_p3 }
  0x3c   : > { %p1349_p4 = pneg %p1348_p2 }
  0x3e   : > { %p1354_p13 = pnand %p1352_p11, %p1349_p4 }
  0x40   : > { %1357 = shalt.err (!%p1354_p13)
}
  0x41   : > { %s1358_s8 = scalar_lea.vmem %s138_s6, 32  ;;  %p1366_p7 = scmp.lt.s32.totalorder %s138_s6, %s138_s6 }
  0x42   : > { %p1359_p10 = scmp.ne.s32.totalorder %s138_s6, %s1358_s8  ;;  %p1367_p5 = scmp.lt.s32.totalorder %s1358_s8, %s1358_s8 }
  0x44   : > { %p1361_p8 = pnand %p1359_p10, %p1347_p1  ;;  %p1368_p12 = por %p1367_p5, %p1366_p7 }
  0x46   : > { %p1362_p9 = pneg %p1361_p8 }
  0x48   : > { %p1369_p6 = pnand %p1368_p12, %p1362_p9 }
  0x4a   : > { %1372 = shalt.err (!%p1369_p6)
}
  0x4b   : > { %1253 = dma.hbm_to_vmem [thread:$0]  (!%p1623_p0), %s1867_s0, 32, %s138_s6, [#allocation3]  }
  0x4c   : > { %s1373_s21 = scalar_lea.hbm %s1630_s20, 128  ;;  %p1884_p10 = scmp.ne.s32.totalorder %s1878_s27, 0 }
  0x4d   : > { %p1374_p3 = scmp.ne.s32.totalorder %s1630_s20, %s1373_s21  ;;  %s1378_s25 = scalar_lea.hbm %s1869_s2, 256 }
  0x4e   : > { %p1885_p8 = pneg %p1884_p10  ;;  %p1379_p6 = scmp.lt.u32.totalorder %s1630_s20, %s1869_s2 }
  0x4f   : > { %p1380_p5 = scmp.lt.u32.totalorder %s1378_s25, %s1373_s21  ;;  %p1382_p9 = scmp.lt.u32.totalorder %s1373_s21, %s1630_s20 }
  0x50   : > { %p1376_p1 = pnand %p1374_p3, %p1885_p8 }
  0x51   : > { %p1381_p7 = por %p1380_p5, %p1379_p6 }
  0x52   : > { %p1377_p2 = pneg %p1376_p1 }
  0x53   : > { %p1383_p12 = por %p1382_p9, %p1381_p7 }
  0x55   : > { %p1384_p4 = pnand %p1383_p12, %p1377_p2 }
  0x57   : > { %1387 = shalt.err (!%p1384_p4)
}
  0x58   : > { %s1388_s6 = scalar_lea.vmem %s1632_s10, 128  ;;  %p1886_p11 = pmov %p1885_p8 }
  0x59   : > { %p1389_p0 = scmp.ne.s32.totalorder %s1632_s10, %s1388_s6  ;;  %s1480_s7 = smov [#allocation7]  }
  0x5a   : > { %s1393_s9 = sshll.u32 %s1480_s7, 4  ;;  %s1394_s9 = int_to_ptr.vmem [resolvable:$false] %s1393_s9 }
  0x5b   : > { %p1391_p13 = pnand %p1389_p0, %p1886_p11  ;;  %s1395_s8 = scalar_lea.vmem %s1394_s9, 256 }
  0x5c   : > { %p1396_p8 = scmp.lt.s32.totalorder %s1632_s10, %s1394_s9  ;;  %p1397_p1 = scmp.lt.s32.totalorder %s1395_s8, %s1388_s6 }
  0x5d   : > { %p1392_p3 = pneg %p1391_p13 }
  0x5e   : > { %p1398_p6 = por %p1397_p1, %p1396_p8 }
  0x60   : > { %p1399_p5 = pnand %p1398_p6, %p1392_p3 }
  0x62   : > { %1402 = shalt.err (!%p1399_p5)
}
  0x63   : > { %1260 = dma.hbm_to_vmem [thread:$0]  (!%p1884_p10), %s1630_s20, 128, %s1632_s10, %s1557_s30  }
  0x64   : > { %p1887_p2 = scmp.ne.s32.totalorder %s1882_s4, 0 }
  0x65   : > { %p1888_p7 = scmp.eq.s32.totalorder (!%p1887_p2), %s1586_s24, 0 }
  0x66   : > { %190 = sbr.rel (%p1887_p2) target bundleno = 434 (0x1b2), region = 32 }
  0x6d   : > { %1448 = dma.done.wait (%p1888_p7), [#allocation3], 32   ;;  %p1889_p9 = pmov %p1888_p7 }
  0x6e   : > { %s196_s17 = sand.u32 1, %s1586_s24   ;;  %s1682_s18 = sand.u32 1, %s1465_s13  }
  0x6f   : > { %1450 = vsyncadd (%p1889_p9), [#allocation3], 4294967264  ;;  %s1239_s27 = smul.u32 608, %s1682_s18  ;;  %s197_s21 = scalar_lea.sflag [#allocation6], %s196_s17 }
  0x70   : > { %p1890_p10 = scmp.ne.s32.totalorder %s1879_s28, 0 }
  0x71   : > { %s1685_s22 = scalar_lea.vmem [#allocation5], %s1239_s27 }
  0x72   : > { %1452 = dma.done.wait (%p1890_p10), %s197_s21, 9856  }
  0x73   : > { %1454 = vsyncadd (%p1890_p10), %s197_s21, 4294957440  ;;  %v242_v0 = vld [vmem:[%s1685_s22] sm:$0xff]  ;;  %v243_v2 = vld [vmem:[%s1685_s22 + $0x8] sm:$0xff]  ;;  %v1481_v19 = vmov 1966171168   ;;  %v330_v21 = vlaneseq  ;;  %vm722_vm0 = vcmask 179200  }
  0x74   : > { %v246_v1 = vld [vmem:[%s1685_s22 + $0x20] sm:$0xff]  ;;  %v247_v4 = vld [vmem:[%s1685_s22 + $0x28] sm:$0xff]  ;;  %v328_v20 = vunpack.c.l.s4 %v1481_v19  ;;  %v1716_v43 = vld.sshfl [vmem:[#allocation2] sm:$0x11 pattern:$0x75316420] }
  0x75   : > { %v1143_v3 = vcombine.high %v242_v0, %v246_v1  ;;  %v1142_v5 = vcombine.low %v242_v0, %v246_v1  ;;  %v250_v6 = vld [vmem:[%s1685_s22 + $0x40] sm:$0xff]  ;;  %v1145_v8 = vcombine.high %v243_v2, %v247_v4  ;;  %v1144_v9 = vcombine.low %v243_v2, %v247_v4  ;;  %v251_v11 = vld [vmem:[%s1685_s22 + $0x48] sm:$0xff]  ;;  %s1139_s30 = sshll.u32 %s1682_s18, 3  ;;  %s1140_s4 = sshll.u32 %s1682_s18, 4 }
  0x76   : > { %v254_v7 = vld [vmem:[%s1685_s22 + $0x60] sm:$0xff]  ;;  %v255_v12 = vld [vmem:[%s1685_s22 + $0x68] sm:$0xff]  ;;  %v329_v30 = vunpack.c.0.s8 %v328_v20  ;;  %v1707_v31 = vshrl.u32 %v330_v21, 7  ;;  %v326_v47 = vcombine.high %v1716_v43, %v1716_v43  ;;  %vm726_vm1 = vcmask 1042432   ;;  %s209_s28 = scalar_lea.vmem [#allocation7], %s1139_s30  ;;  %s1810_s10 = scalar_lea.vmem [#allocation8], %s1140_s4 }
  0x77   : > { %v1151_v10 = vcombine.high %v250_v6, %v254_v7  ;;  %v258_v13 = vld [vmem:[%s1685_s22 + $0x80] sm:$0xff]  ;;  %751 = vmatprep.subr.bf16.mxu0 %v1143_v3  ;;  %v1153_v14 = vcombine.high %v251_v11, %v255_v12  ;;  %v259_v16 = vld [vmem:[%s1685_s22 + $0x88] sm:$0xff]  ;;  %792 = vmatprep.subr.bf16.mxu1 %v1145_v8  ;;  %v1150_v18 = vcombine.low %v250_v6, %v254_v7  ;;  %s1237_s20 = sshll.u32 %s1586_s24, 8  ;;  %s1026_s23 = sshll.u32 %s1810_s10, 4  ;;  %s1824_s23 = int_to_ptr.vmem [resolvable:$true] %s1026_s23 }
  0x78   : > { %v262_v15 = vld [vmem:[%s1685_s22 + $0xa0] sm:$0xff]  ;;  %v263_v17 = vld [vmem:[%s1685_s22 + $0xa8] sm:$0xff]  ;;  %752 = vmatpush1.bf16.msra.mxu0 %v1142_v5  ;;  %793 = vmatpush1.bf16.msra.mxu1 %v1144_v9  ;;  %v1152_v22 = vcombine.low %v251_v11, %v255_v12  ;;  %v1714_v40 = vsub.s32 %v329_v30, %v1707_v31  ;;  %s1822_s5 = scalar_lea.hbm %s1870_s3, %s1237_s20  ;;  %s1012_s6 = scalar_lea.sflag [#allocation4], %s1682_s18 }
  0x79   : > { %753 = vmatprep.subr.bf16.mxu0 %v1151_v10  ;;  %v1159_v23 = vcombine.high %v258_v13, %v262_v15  ;;  %794 = vmatprep.subr.bf16.mxu1 %v1153_v14  ;;  %v1161_v24 = vcombine.high %v259_v16, %v263_v17  ;;  %v266_v25 = vld [vmem:[%s1685_s22 + $0xc0] sm:$0xff]  ;;  %v267_v27 = vld [vmem:[%s1685_s22 + $0xc8] sm:$0xff]  ;;  %v1158_v29 = vcombine.low %v258_v13, %v262_v15  ;;  %s1403_s7 = scalar_lea.vmem %s1824_s23, 256  ;;  %p1891_p4 = scmp.ne.s32.totalorder %s1880_s26, 0 }
  0x7a   : > { %v270_v26 = vld [vmem:[%s1685_s22 + $0xe0] sm:$0xff]  ;;  %v271_v28 = vld [vmem:[%s1685_s22 + $0xe8] sm:$0xff]  ;;  %v1160_v32 = vcombine.low %v259_v16, %v263_v17  ;;  %v1725_v51 = vrot.slane %v326_v47, %v1714_v40  ;;  %p1404_p12 = scmp.ne.s32.totalorder %s1824_s23, %s1403_s7  ;;  %s1483_s24 = smov [#allocation8]  }
  0x7b   : > { %v1167_v33 = vcombine.high %v266_v25, %v270_v26  ;;  %v1169_v34 = vcombine.high %v267_v27, %v271_v28  ;;  %v274_v35 = vld [vmem:[%s1685_s22 + $0x100] sm:$0xff]  ;;  %v275_v37 = vld [vmem:[%s1685_s22 + $0x108] sm:$0xff]  ;;  %v1166_v39 = vcombine.low %v266_v25, %v270_v26  ;;  %v1168_v41 = vcombine.low %v267_v27, %v271_v28  ;;  %v245_v25 = vld [vmem:[%s1685_s22 + $0x18] sm:$0xff]  ;;  %s1407_s9 = sshll.u32 %s1483_s24, 4  ;;  %s1408_s9 = int_to_ptr.vmem [resolvable:$false] %s1407_s9 }
  0x7c   : > { %754 = vmatpush1.bf16.msra.mxu0 %v1150_v18  ;;  %795 = vmatpush1.bf16.msra.mxu1 %v1152_v22  ;;  %v278_v36 = vld [vmem:[%s1685_s22 + $0x120] sm:$0xff]  ;;  %v279_v38 = vld [vmem:[%s1685_s22 + $0x128] sm:$0xff]  ;;  %v249_v26 = vld [vmem:[%s1685_s22 + $0x38] sm:$0xff]  ;;  %p1405_p0 = pnand %p1404_p12, %p1891_p4  ;;  %s1409_s8 = scalar_lea.vmem %s1408_s9, 512 }
  0x7d   : > { %755 = vmatprep.subr.bf16.mxu0 %v1159_v23  ;;  %796 = vmatprep.subr.bf16.mxu1 %v1161_v24  ;;  %v1175_v42 = vcombine.high %v274_v35, %v278_v36  ;;  %v1177_v44 = vcombine.high %v275_v37, %v279_v38  ;;  %v282_v45 = vld [vmem:[%s1685_s22 + $0x140] sm:$0xff]  ;;  %v283_v48 = vld [vmem:[%s1685_s22 + $0x148] sm:$0xff]  ;;  %v1174_v50 = vcombine.low %v274_v35, %v278_v36  ;;  %v244_v23 = vld [vmem:[%s1685_s22 + $0x10] sm:$0xff]  ;;  %p1410_p13 = scmp.lt.s32.totalorder %s1824_s23, %s1408_s9  ;;  %p1411_p3 = scmp.lt.s32.totalorder %s1409_s8, %s1403_s7 }
  0x7e   : > { %v286_v46 = vld [vmem:[%s1685_s22 + $0x160] sm:$0xff]  ;;  %v287_v49 = vld [vmem:[%s1685_s22 + $0x168] sm:$0xff]  ;;  %v1176_v52 = vcombine.low %v275_v37, %v279_v38  ;;  %1223 = vmatprep.mubr.msk.bf16.mxu0 %vm722_vm0, %v1725_v51  ;;  %1225 = vmatprep.mubr.msk.bf16.mxu1 %vm722_vm0, %v1725_v51  ;;  %v248_v24 = vld [vmem:[%s1685_s22 + $0x30] sm:$0xff]  ;;  %v1149_v30 = vcombine.high %v245_v25, %v249_v26  ;;  %v1148_v38 = vcombine.low %v245_v25, %v249_v26  ;;  %p1406_p11 = pneg %p1405_p0 }
  0x7f   : > { %v1183_v53 = vcombine.high %v282_v45, %v286_v46  ;;  %v1185_v54 = vcombine.high %v283_v48, %v287_v49  ;;  %v290_v55 = vld [vmem:[%s1685_s22 + $0x180] sm:$0xff]  ;;  %v291_v57 = vld [vmem:[%s1685_s22 + $0x188] sm:$0xff]  ;;  %v1182_v59 = vcombine.low %v282_v45, %v286_v46  ;;  %v1184_v60 = vcombine.low %v283_v48, %v287_v49  ;;  %v253_v35 = vld [vmem:[%s1685_s22 + $0x58] sm:$0xff]  ;;  %p1412_p8 = por %p1411_p3, %p1410_p13 }
  0x80   : > { %756 = vmatpush1.bf16.msra.mxu0 %v1158_v29  ;;  %797 = vmatpush1.bf16.msra.mxu1 %v1160_v32  ;;  %v294_v56 = vld [vmem:[%s1685_s22 + $0x1a0] sm:$0xff]  ;;  %v295_v58 = vld [vmem:[%s1685_s22 + $0x1a8] sm:$0xff]  ;;  %v1147_v28 = vcombine.high %v244_v23, %v248_v24  ;;  %v252_v32 = vld [vmem:[%s1685_s22 + $0x50] sm:$0xff]  ;;  %v1146_v37 = vcombine.low %v244_v23, %v248_v24 }
  0x81   : > { %757 = vmatprep.subr.bf16.mxu0 %v1167_v33  ;;  %798 = vmatprep.subr.bf16.mxu1 %v1169_v34  ;;  %v1191_v61 = vcombine.high %v290_v55, %v294_v56  ;;  %v1193_v62 = vcombine.high %v291_v57, %v295_v58  ;;  %v298_v63 = vld [vmem:[%s1685_s22 + $0x1c0] sm:$0xff]  ;;  %v299_v1 = vld [vmem:[%s1685_s22 + $0x1c8] sm:$0xff]  ;;  %v1190_v3 = vcombine.low %v290_v55, %v294_v56  ;;  %v256_v33 = vld [vmem:[%s1685_s22 + $0x70] sm:$0xff]  ;;  %p1413_p1 = pnand %p1412_p8, %p1406_p11 }
  0x82   : > { %v302_v0 = vld [vmem:[%s1685_s22 + $0x1e0] sm:$0xff]  ;;  %v303_v2 = vld [vmem:[%s1685_s22 + $0x1e8] sm:$0xff]  ;;  %v1192_v4 = vcombine.low %v291_v57, %v295_v58  ;;  %v1757_v34 = vrot.slane %v1716_v43, %v1714_v40  ;;  %v257_v36 = vld [vmem:[%s1685_s22 + $0x78] sm:$0xff]  ;;  %v1154_v45 = vcombine.low %v252_v32, %v256_v33 }
  0x83   : > { %v1199_v5 = vcombine.high %v298_v63, %v302_v0  ;;  %v1201_v6 = vcombine.high %v299_v1, %v303_v2  ;;  %v306_v7 = vld [vmem:[%s1685_s22 + $0x200] sm:$0xff]  ;;  %v307_v9 = vld [vmem:[%s1685_s22 + $0x208] sm:$0xff]  ;;  %v1198_v11 = vcombine.low %v298_v63, %v302_v0  ;;  %v1200_v12 = vcombine.low %v299_v1, %v303_v2  ;;  %v261_v40 = vld [vmem:[%s1685_s22 + $0x98] sm:$0xff] }
  0x84   : > { %758 = vmatpush1.bf16.msra.mxu0 %v1166_v39  ;;  %799 = vmatpush1.bf16.msra.mxu1 %v1168_v41  ;;  %v310_v8 = vld [vmem:[%s1685_s22 + $0x220] sm:$0xff]  ;;  %v311_v10 = vld [vmem:[%s1685_s22 + $0x228] sm:$0xff]  ;;  %v1155_v39 = vcombine.high %v252_v32, %v256_v33  ;;  %v1157_v41 = vcombine.high %v253_v35, %v257_v36  ;;  %v265_v43 = vld [vmem:[%s1685_s22 + $0xb8] sm:$0xff]  ;;  %v1156_v46 = vcombine.low %v253_v35, %v257_v36 }
  0x85   : > { %759 = vmatprep.subr.bf16.mxu0 %v1175_v42  ;;  %800 = vmatprep.subr.bf16.mxu1 %v1177_v44  ;;  %v1207_v13 = vcombine.high %v306_v7, %v310_v8  ;;  %v1209_v14 = vcombine.high %v307_v9, %v311_v10  ;;  %v314_v15 = vld [vmem:[%s1685_s22 + $0x240] sm:$0x77]  ;;  %v315_v16 = vld [vmem:[%s1685_s22 + $0x248] sm:$0x77]  ;;  %v1206_v17 = vcombine.low %v306_v7, %v310_v8  ;;  %v260_v42 = vld [vmem:[%s1685_s22 + $0x90] sm:$0xff] }
  0x86   : > { %v1208_v18 = vcombine.low %v307_v9, %v311_v10  ;;  %v1215_v19 = vcombine.high %v314_v15, %v314_v15  ;;  %v1214_v20 = vcombine.low %v314_v15, %v314_v15  ;;  %v1217_v21 = vcombine.high %v315_v16, %v315_v16  ;;  %v264_v44 = vld [vmem:[%s1685_s22 + $0xb0] sm:$0xff]  ;;  %v317_v36 = vld [vmem:[%s1685_s22 + $0x258] sm:$0x77] }
  0x87   : > { %v1216_v22 = vcombine.low %v315_v16, %v315_v16  ;;  %v1163_v47 = vcombine.high %v260_v42, %v264_v44  ;;  %v1165_v48 = vcombine.high %v261_v40, %v265_v43  ;;  %v268_v49 = vld [vmem:[%s1685_s22 + $0xd0] sm:$0xff]  ;;  %v1164_v55 = vcombine.low %v261_v40, %v265_v43 }
  0x88   : > { %760 = vmatpush1.bf16.msra.mxu0 %v1174_v50  ;;  %801 = vmatpush1.bf16.msra.mxu1 %v1176_v52  ;;  %v728_v27 = vsel %vm726_vm1, %v1214_v20, 0  ;;  %v272_v50 = vld [vmem:[%s1685_s22 + $0xf0] sm:$0xff]  ;;  %v269_v52 = vld [vmem:[%s1685_s22 + $0xd8] sm:$0xff] }
  0x89   : > { %761 = vmatprep.subr.bf16.mxu0 %v1183_v53  ;;  %802 = vmatprep.subr.bf16.mxu1 %v1185_v54  ;;  %v734_v29 = vsel %vm726_vm1, %v1216_v22, 0  ;;  %v273_v53 = vld [vmem:[%s1685_s22 + $0xf8] sm:$0xff]  ;;  %v1162_v54 = vcombine.low %v260_v42, %v264_v44  ;;  %v1171_v56 = vcombine.high %v268_v49, %v272_v50  ;;  %v276_v58 = vld [vmem:[%s1685_s22 + $0x110] sm:$0xff]  ;;  %v1221_v42 = vcombine.high %v317_v36, %v317_v36 }
  0x8a   : > { %v1173_v57 = vcombine.high %v269_v52, %v273_v53  ;;  %v284_v1 = vld [vmem:[%s1685_s22 + $0x150] sm:$0xff]  ;;  %v305_v20 = vld [vmem:[%s1685_s22 + $0x1f8] sm:$0xff]  ;;  %v1220_v44 = vcombine.low %v317_v36, %v317_v36 }
  0x8b   : > { %v288_v2 = vld [vmem:[%s1685_s22 + $0x170] sm:$0xff] }
  0x8c   : > { %762 = vmatpush1.bf16.msra.mxu0 %v1182_v59  ;;  %803 = vmatpush1.bf16.msra.mxu1 %v1184_v60  ;;  %v280_v59 = vld [vmem:[%s1685_s22 + $0x130] sm:$0xff]  ;;  %v277_v60 = vld [vmem:[%s1685_s22 + $0x118] sm:$0xff]  ;;  %v1187_v7 = vcombine.high %v284_v1, %v288_v2  ;;  %v746_v43 = vsel %vm726_vm1, %v1220_v44, 0 }
  0x8d   : > { %763 = vmatprep.subr.bf16.mxu0 %v1191_v61  ;;  %804 = vmatprep.subr.bf16.mxu1 %v1193_v62  ;;  %v281_v61 = vld [vmem:[%s1685_s22 + $0x138] sm:$0xff]  ;;  %v1170_v62 = vcombine.low %v268_v49, %v272_v50  ;;  %v1179_v63 = vcombine.high %v276_v58, %v280_v59  ;;  %v292_v9 = vld [vmem:[%s1685_s22 + $0x190] sm:$0xff]  ;;  %v1482_v49 = vmov 1983009808  }
  0x8e   : > { %v1181_v0 = vcombine.high %v277_v60, %v281_v61  ;;  %v296_v10 = vld [vmem:[%s1685_s22 + $0x1b0] sm:$0xff]  ;;  %v976_v50 = vunpack.c.l.s4 %v1482_v49 }
  0x8f   : > { %v1195_v15 = vcombine.high %v292_v9, %v296_v10  ;;  %v308_v25 = vld [vmem:[%s1685_s22 + $0x210] sm:$0xff] }
  0x90   : > { %764 = vmatpush1.bf16.msra.mxu0 %v1190_v3  ;;  %805 = vmatpush1.bf16.msra.mxu1 %v1192_v4  ;;  %v285_v3 = vld [vmem:[%s1685_s22 + $0x158] sm:$0xff]  ;;  %v312_v26 = vld [vmem:[%s1685_s22 + $0x230] sm:$0xff] }
  0x91   : > { %765 = vmatprep.subr.bf16.mxu0 %v1199_v5  ;;  %806 = vmatprep.subr.bf16.mxu1 %v1201_v6  ;;  %v289_v4 = vld [vmem:[%s1685_s22 + $0x178] sm:$0xff]  ;;  %v1178_v5 = vcombine.low %v276_v58, %v280_v59  ;;  %v1180_v6 = vcombine.low %v277_v60, %v281_v61  ;;  %v1211_v32 = vcombine.high %v308_v25, %v312_v26  ;;  %v316_v35 = vld [vmem:[%s1685_s22 + $0x250] sm:$0x77] }
  0x92   : > { %v1189_v8 = vcombine.high %v285_v3, %v289_v4 }
  0x94   : > { %766 = vmatpush1.bf16.msra.mxu0 %v1198_v11  ;;  %807 = vmatpush1.bf16.msra.mxu1 %v1200_v12  ;;  %v293_v11 = vld [vmem:[%s1685_s22 + $0x198] sm:$0xff] }
  0x95   : > { %767 = vmatprep.subr.bf16.mxu0 %v1207_v13  ;;  %808 = vmatprep.subr.bf16.mxu1 %v1209_v14  ;;  %v297_v12 = vld [vmem:[%s1685_s22 + $0x1b8] sm:$0xff]  ;;  %v1186_v13 = vcombine.low %v284_v1, %v288_v2  ;;  %v1188_v14 = vcombine.low %v285_v3, %v289_v4 }
  0x96   : > { %v1197_v16 = vcombine.high %v293_v11, %v297_v12  ;;  %v1196_v22 = vcombine.low %v293_v11, %v297_v12  ;;  %v943_v11 = vsub.s32 6, %v1707_v31  ;;  %v939_v12 = vsub.s32 5, %v1707_v31 }
  0x98   : > { %768 = vmatpush1.bf16.msra.mxu0 %v1206_v17  ;;  %809 = vmatpush1.bf16.msra.mxu1 %v1208_v18  ;;  %v300_v17 = vld [vmem:[%s1685_s22 + $0x1d0] sm:$0xff] }
  0x99   : > { %1222 = vmatprep.subr.msk.bf16.mxu0 %vm726_vm1, %v1215_v19  ;;  %1224 = vmatprep.subr.msk.bf16.mxu1 %vm726_vm1, %v1217_v21  ;;  %v304_v18 = vld [vmem:[%s1685_s22 + $0x1f0] sm:$0xff]  ;;  %v301_v19 = vld [vmem:[%s1685_s22 + $0x1d8] sm:$0xff]  ;;  %v1194_v21 = vcombine.low %v292_v9, %v296_v10  ;;  %v935_v10 = vsub.s32 4, %v1707_v31 }
  0x9a   : > { %v1203_v23 = vcombine.high %v300_v17, %v304_v18  ;;  %v1205_v24 = vcombine.high %v301_v19, %v305_v20 }
  0x9c   : > { %770 = vmatpush1.bf16.msra.mxu0 %v728_v27  ;;  %811 = vmatpush1.bf16.msra.mxu1 %v734_v29  ;;  %v309_v27 = vld [vmem:[%s1685_s22 + $0x218] sm:$0xff]  ;;  %v1202_v29 = vcombine.low %v300_v17, %v304_v18 }
  0x9d   : > { %833 = vmatprep.subr.bf16.mxu0 %v1147_v28  ;;  %874 = vmatprep.subr.bf16.mxu1 %v1149_v30  ;;  %v313_v28 = vld [vmem:[%s1685_s22 + $0x238] sm:$0xff]  ;;  %v1204_v30 = vcombine.low %v301_v19, %v305_v20 }
  0x9e   : > { %v1213_v33 = vcombine.high %v309_v27, %v313_v28 }
  0x9f   : > { %784 = vmatmul.mubr.bf16.vlgmr.msra.gmra.mrb[0].mxu0 %v1757_v34  ;;  %825 = vmatmul.mubr.bf16.vlgmr.msra.gmra.mrb[0].mxu1 %v1757_v34 }
  0xa0   : > { %834 = vmatpush1.bf16.msra.mxu0 %v1146_v37  ;;  %875 = vmatpush1.bf16.msra.mxu1 %v1148_v38  ;;  %v1210_v37 = vcombine.low %v308_v25, %v312_v26  ;;  %v1212_v38 = vcombine.low %v309_v27, %v313_v28 }
  0xa1   : > { %835 = vmatprep.subr.bf16.mxu0 %v1155_v39  ;;  %876 = vmatprep.subr.bf16.mxu1 %v1157_v41  ;;  %v1219_v39 = vcombine.high %v316_v35, %v316_v35  ;;  %v1218_v41 = vcombine.low %v316_v35, %v316_v35 }
  0xa2   : > { %1227 = vmatprep.mubr.msk.bf16.mxu0 %vm722_vm0, %v1725_v51  ;;  %1229 = vmatprep.mubr.msk.bf16.mxu1 %vm722_vm0, %v1725_v51  ;;  %v1172_v51 = vcombine.low %v269_v52, %v273_v53  ;;  %v931_v52 = vsub.s32 3, %v1707_v31 }
  0xa3   : > { %v740_v40 = vsel %vm726_vm1, %v1218_v41, 0 }
  0xa4   : > { %836 = vmatpush1.bf16.msra.mxu0 %v1154_v45  ;;  %877 = vmatpush1.bf16.msra.mxu1 %v1156_v46  ;;  %v919_v45 = vsub.s32 0, %v1707_v31  ;;  %v915_v46 = vld [vmem:[%s209_s28] sm:$0xff] }
  0xa5   : > { %837 = vmatprep.subr.bf16.mxu0 %v1163_v47  ;;  %878 = vmatprep.subr.bf16.mxu1 %v1165_v48  ;;  %v927_v47 = vsub.s32 2, %v1707_v31  ;;  %v923_v48 = vsub.s32 1, %v1707_v31 }
  0xa6   : > { %v920_v53 = vrot.slane %v915_v46, %v919_v45 }
  0xa8   : > { %838 = vmatpush1.bf16.msra.mxu0 %v1162_v54  ;;  %879 = vmatpush1.bf16.msra.mxu1 %v1164_v55  ;;  %v928_v54 = vrot.slane %v915_v46, %v927_v47  ;;  %v924_v55 = vrot.slane %v915_v46, %v923_v48 }
  0xa9   : > { %839 = vmatprep.subr.bf16.mxu0 %v1171_v56  ;;  %880 = vmatprep.subr.bf16.mxu1 %v1173_v57  ;;  %v977_v56 = vunpack.c.0.s8 %v976_v50  ;;  %v932_v57 = vrot.slane %v915_v46, %v931_v52 }
  0xac   : > { %840 = vmatpush1.bf16.msra.mxu0 %v1170_v62  ;;  %881 = vmatpush1.bf16.msra.mxu1 %v1172_v51  ;;  %v980_v51 = vsub.s32 %v977_v56, %v1707_v31 }
  0xad   : > { %841 = vmatprep.subr.bf16.mxu0 %v1179_v63  ;;  %882 = vmatprep.subr.bf16.mxu1 %v1181_v0 }
  0xb0   : > { %842 = vmatpush1.bf16.msra.mxu0 %v1178_v5  ;;  %883 = vmatpush1.bf16.msra.mxu1 %v1180_v6 }
  0xb1   : > { %843 = vmatprep.subr.bf16.mxu0 %v1187_v7  ;;  %884 = vmatprep.subr.bf16.mxu1 %v1189_v8 }
  0xb4   : > { %844 = vmatpush1.bf16.msra.mxu0 %v1186_v13  ;;  %885 = vmatpush1.bf16.msra.mxu1 %v1188_v14  ;;  %v947_v13 = vsub.s32 7, %v1707_v31  ;;  %v936_v14 = vrot.slane %v915_v46, %v935_v10 }
  0xb5   : > { %845 = vmatprep.subr.bf16.mxu0 %v1195_v15  ;;  %886 = vmatprep.subr.bf16.mxu1 %v1197_v16  ;;  %v944_v15 = vrot.slane %v915_v46, %v943_v11  ;;  %v940_v16 = vrot.slane %v915_v46, %v939_v12 }
  0xb6   : > { %v948_v17 = vrot.slane %v915_v46, %v947_v13 }
  0xb8   : > { %846 = vmatpush1.bf16.msra.mxu0 %v1194_v21  ;;  %887 = vmatpush1.bf16.msra.mxu1 %v1196_v22 }
  0xb9   : > { %847 = vmatprep.subr.bf16.mxu0 %v1203_v23  ;;  %888 = vmatprep.subr.bf16.mxu1 %v1205_v24 }
  0xbc   : > { %848 = vmatpush1.bf16.msra.mxu0 %v1202_v29  ;;  %889 = vmatpush1.bf16.msra.mxu1 %v1204_v30 }
  0xbd   : > { %849 = vmatprep.subr.bf16.mxu0 %v1211_v32  ;;  %890 = vmatprep.subr.bf16.mxu1 %v1213_v33 }
  0xc0   : > { %850 = vmatpush1.bf16.msra.mxu0 %v1210_v37  ;;  %891 = vmatpush1.bf16.msra.mxu1 %v1212_v38 }
  0xc1   : > { %1226 = vmatprep.subr.msk.bf16.mxu0 %vm726_vm1, %v1219_v39  ;;  %1228 = vmatprep.subr.msk.bf16.mxu1 %vm726_vm1, %v1221_v42 }
  0xc4   : > { %852 = vmatpush1.bf16.msra.mxu0 %v740_v40  ;;  %893 = vmatpush1.bf16.msra.mxu1 %v746_v43 }
  0xc7   : > { %866 = vmatmul.mubr.bf16.vlgmr.msra.gmra.mrb[4].mxu0 %v1757_v34  ;;  %907 = vmatmul.mubr.bf16.vlgmr.msra.gmra.mrb[4].mxu1 %v1757_v34 }
 0x172   : > { %v785_v34 = vpop.f32.mrb[0].mxu0  ;;  %v826_v59 = vpop.f32.mrb[0].mxu1 }
 0x173   : > { %v957_v58 = vadd.f32 %v920_v53, %v785_v34  ;;  %v787_v60 = vpop.f32.mrb[1].mxu0  ;;  %v959_v61 = vadd.f32 %v928_v54, %v826_v59  ;;  %v828_v63 = vpop.f32.mrb[1].mxu1 }
 0x174   : > { %v958_v62 = vadd.f32 %v924_v55, %v787_v60  ;;  %v789_v0 = vpop.f32.mrb[2].mxu0  ;;  %v960_v1 = vadd.f32 %v932_v57, %v828_v63  ;;  %v830_v2 = vpop.f32.mrb[2].mxu1 }
 0x175   : > { %v790_v3 = vpop.f32.mrb[3].mxu0  ;;  %v831_v5 = vpop.f32.mrb[3].mxu1 }
 0x176   : > { %v973_v4 = vcombine.low %v957_v58, %v958_v62  ;;  %v974_v6 = vcombine.low %v959_v61, %v960_v1 }
 0x178   : > { %v981_v7 = vrot.slane %v973_v4, %v980_v51  ;;  %v988_v8 = vrot.slane %v974_v6, %v980_v51 }
 0x17a   : > { %v989_v9 = vcombine.low %v981_v7, %v988_v8 }
 0x17c   : > { %1009 = vst [vmem:[%s1810_s10] sm:$0xff] %v989_v9 }
 0x19a   : > { %v867_v18 = vpop.f32.mrb[4].mxu0  ;;  %v908_v20 = vpop.f32.mrb[4].mxu1 }
 0x19b   : > { %v961_v19 = vadd.f32 %v936_v14, %v867_v18  ;;  %v869_v21 = vpop.f32.mrb[5].mxu0  ;;  %v963_v22 = vadd.f32 %v944_v15, %v908_v20  ;;  %v910_v24 = vpop.f32.mrb[5].mxu1 }
 0x19c   : > { %v962_v23 = vadd.f32 %v940_v16, %v869_v21  ;;  %v871_v25 = vpop.f32.mrb[6].mxu0  ;;  %v964_v26 = vadd.f32 %v948_v17, %v910_v24  ;;  %v912_v27 = vpop.f32.mrb[6].mxu1 }
 0x19d   : > { %v872_v31 = vpop.f32.mrb[7].mxu0  ;;  %v913_v29 = vpop.f32.mrb[7].mxu1 }
 0x19e   : > { %v990_v28 = vcombine.low %v961_v19, %v962_v23  ;;  %v991_v30 = vcombine.low %v963_v22, %v964_v26 }
 0x1a0   : > { %v998_v32 = vrot.slane %v990_v28, %v980_v51  ;;  %v1005_v33 = vrot.slane %v991_v30, %v980_v51 }
 0x1a2   : > { %v1006_v35 = vcombine.low %v998_v32, %v1005_v33 }
 0x1a4   : > { %1010 = vst [vmem:[%s1810_s10 + $0x8] sm:$0xff] %v1006_v35 }
 0x1a5   : > { %1416 = shalt.err (!%p1413_p1)
}
 0x1a6   : > { %s1417_s17 = scalar_lea.hbm %s1822_s5, 256  ;;  %s1421_s21 = scalar_lea.hbm %s1870_s3, 512 }
 0x1a7   : > { %p1418_p6 = scmp.ne.s32.totalorder %s1822_s5, %s1417_s17  ;;  %p1422_p7 = scmp.lt.u32.totalorder %s1822_s5, %s1870_s3 }
 0x1a8   : > { %p1423_p9 = scmp.lt.u32.totalorder %s1421_s21, %s1417_s17  ;;  %p1425_p12 = scmp.lt.u32.totalorder %s1417_s17, %s1822_s5 }
 0x1a9   : > { %p1419_p5 = pnand %p1418_p6, %p1891_p4 }
 0x1aa   : > { %p1424_p10 = por %p1423_p9, %p1422_p7 }
 0x1ab   : > { %p1420_p2 = pneg %p1419_p5 }
 0x1ac   : > { %p1426_p0 = por %p1425_p12, %p1424_p10 }
 0x1ae   : > { %p1427_p11 = pnand %p1426_p0, %p1420_p2 }
 0x1b0   : > { %1430 = shalt.err (!%p1427_p11)
}
 0x1b1   : > { %1248 = dma.vmem_to_hbm [thread:$0]  (%p1891_p4), %s1824_s23, 256, %s1822_s5, %s1012_s6  }
 0x1b2 PF: > { %s1038_s28 = sand.u32 1, %s1461_s12   ;;  %p1892_p13 = scmp.ne.s32.totalorder %s1881_s29, 0 }
 0x1b3   : > { %p1893_p3 = scmp.ge.s32.totalorder %s1473_s15, 2  ;;  %s1039_s4 = scalar_lea.sflag [#allocation4], %s1038_s28 }
 0x1b5   : > { %p1262_p8 = pnand %p1893_p3, %p1892_p13 }
 0x1b7   : > { %1456 = dma.done.wait (!%p1262_p8), %s1039_s4, 256  }
 0x1b8   : > { %1458 = vsyncadd (!%p1262_p8), %s1039_s4, 4294967040  ;;  %p17_p1 = scmp.ge.s32.totalorder %s1525_s16, 4   ;;  %s1894_s12 = smov %s1465_s13 }
 0x1b9   : > { %s1895_s13 = smov %s1469_s14  ;;  %s1896_s14 = smov %s1536_s19 }
 0x1ba   : > { %s1897_s15 = smov %s1525_s16  ;;  %19 = sbr.rel (!%p17_p1) target bundleno = 6 (0x6), region = 93 }
 0x1c1   :  { %1044 = vsyncpa [#allocation3], 1 }
 0x1c2   :  { %1046 = vsyncpa [#allocation3 + $0x1], 1 }
 0x1c3   :  { %1047 = vsyncpa [#allocation6], 1 }
 0x1c4   :  { %1049 = vsyncpa [#allocation6 + $0x1], 1 }
 0x1c5   :  { %1050 = vsyncpa [#allocation4], 1 }
 0x1c6   :  { %1052 = vsyncpa [#allocation4 + $0x1], 1 }

</bundles_post_ra>
